<compile_context>
chip_gen: v5e
topology: v5e:2x2
jax: 0.10.0
libtpu: 0.0.40
codegen_flags: <defaults>
</compile_context>

<pallas_src>
import jax
import jax.numpy as jnp
from jax.experimental import pallas as pl
from jax.experimental.pallas import tpu as pltpu


def cat_encoder_cross_kernel(x1_ref, x2_ref, w1_ref, w2_ref, b_ref, o_ref):
    # x1_ref: (1, TM, d1)      x2_ref: (1, n_ent2, d2)
    # w1_ref: (d1, out)        w2_ref: (d2, out)        b_ref: (1, out)
    # o_ref : (1, TM, n_ent2 * out)   -- lane-dense, row-major over (n_ent2, out)
    x1 = x1_ref[0]                       # (TM, d1)
    x2 = x2_ref[0]                       # (n_ent2, d2)
    tm = x1.shape[0]
    n_ent2 = x2.shape[0]
    out_dim = w1_ref.shape[1]

    # Two small MXU matmuls instead of a concat-matmul on the full cross slab.
    p1 = jnp.dot(x1, w1_ref[...], preferred_element_type=jnp.float32)    # (TM, out)
    p2 = jnp.dot(x2, w2_ref[...], preferred_element_type=jnp.float32)
    p2 = p2 + b_ref[...]                                                 # (n_ent2, out)

    # out[i, j, :] = p1[i] + p2[j]  (cheap VPU broadcast-add), stored lane-dense.
    out3 = p1[:, None, :] + p2[None, :, :]                               # (TM, n_ent2, out)
    o_ref[0] = out3.reshape(tm, n_ent2 * out_dim).astype(o_ref.dtype)


def cat_encoder_cross(input1, input2, weight, bias, *, tm=None, vmem_limit_bytes=None):
    """input1: (bs, n_ent1, d1); input2: (bs, n_ent2, d2);
    weight: (d1+d2, output_dim) (i.e. torch Linear weight transposed); bias: (output_dim,)."""
    bs, n_ent1, d1 = input1.shape
    bs2, n_ent2, d2 = input2.shape
    assert bs == bs2
    assert weight.shape[0] == d1 + d2
    out_dim = weight.shape[1]

    # Split the projection weight: concat(x1, x2) @ W == x1 @ W1 + x2 @ W2.
    w1 = weight[:d1, :]
    w2 = weight[d1:, :]
    bias2d = bias.reshape(1, out_dim)

    itemsize = jnp.dtype(input1.dtype).itemsize
    lane_out = n_ent2 * out_dim          # lane-dense flattened output width

    if tm is None:
        # Keep the double-buffered output block around <= 8 MiB (safe on v7x's 64 MiB VMEM).
        budget = 8 << 20
        max_rows = max(1, budget // (2 * lane_out * itemsize))
        tm = min(n_ent1, max_rows, 512)
        if tm < n_ent1:
            tm = max(8, (tm // 8) * 8)   # sublane-aligned partial blocks

    grid = (bs, pl.cdiv(n_ent1, tm))

    if vmem_limit_bytes is None:
        block_bytes = (
            tm * d1 + n_ent2 * d2 + d1 * out_dim + d2 * out_dim + out_dim + tm * lane_out
        ) * itemsize
        # double-buffered blocks + headroom, capped at the v7x scoped default.
        vmem_limit_bytes = int(min(max(4 * block_bytes, 4 << 20), 32 << 20))

    out_flat = pl.pallas_call(
        cat_encoder_cross_kernel,
        out_shape=jax.ShapeDtypeStruct((bs, n_ent1, lane_out), input1.dtype),
        grid_spec=pltpu.PrefetchScalarGridSpec(
            num_scalar_prefetch=0,
            grid=grid,
            in_specs=[
                pl.BlockSpec((1, tm, d1), lambda b, m: (b, m, 0)),
                pl.BlockSpec((1, n_ent2, d2), lambda b, m: (b, 0, 0)),
                pl.BlockSpec((d1, out_dim), lambda b, m: (0, 0)),
                pl.BlockSpec((d2, out_dim), lambda b, m: (0, 0)),
                pl.BlockSpec((1, out_dim), lambda b, m: (0, 0)),
            ],
            out_specs=pl.BlockSpec((1, tm, lane_out), lambda b, m: (b, m, 0)),
        ),
        compiler_params=pltpu.CompilerParams(
            dimension_semantics=("parallel", "parallel"),
            vmem_limit_bytes=vmem_limit_bytes,
        ),
    )(input1, input2, w1, w2, bias2d)

    # Cheap row-major split of the last dim back to (n_ent2, out_dim), outside pallas_call.
    return out_flat.reshape(bs, n_ent1, n_ent2, out_dim)


def cat_encoder_cross_ref(input1, input2, weight, bias):
    bs, n_ent1, d1 = input1.shape
    _, n_ent2, d2 = input2.shape
    x1 = jnp.broadcast_to(input1[:, :, None, :], (bs, n_ent1, n_ent2, d1))
    x2 = jnp.broadcast_to(input2[:, None, :, :], (bs, n_ent1, n_ent2, d2))
    cat = jnp.concatenate([x1, x2], axis=-1)
    proj = jnp.einsum("bijk,kl->bijl", cat, weight,
                      precision=jax.lax.Precision.HIGHEST)
    return proj + bias


if __name__ == "__main__":
    key = jax.random.PRNGKey(0)
    bs, n_ent1, n_ent2 = 2, 8, 8
    d1, d2, output_dim = 16, 16, 32

    k1, k2, kw, kb = jax.random.split(key, 4)
    input1 = jax.random.normal(k1, (bs, n_ent1, d1), dtype=jnp.float32)
    input2 = jax.random.normal(k2, (bs, n_ent2, d2), dtype=jnp.float32)

    # nn.Linear(sum(input_dims), output_dim): weight (out, in), bias (out,).
    in_dim = d1 + d2
    bound = 1.0 / jnp.sqrt(jnp.float32(in_dim))
    w_torch = jax.random.uniform(kw, (output_dim, in_dim), jnp.float32, -bound, bound)
    bias = jax.random.uniform(kb, (output_dim,), jnp.float32, -bound, bound)
    weight = w_torch.T  # (in_dim, output_dim) for x @ W layout used in-kernel

    out = cat_encoder_cross(input1, input2, weight, bias)
    out = jax.block_until_ready(out)

    ref = cat_encoder_cross_ref(input1, input2, weight, bias)
    assert out.shape == (bs, n_ent1, n_ent2, output_dim)
    assert jnp.allclose(out, ref, atol=1e-4, rtol=1e-4), float(jnp.max(jnp.abs(out - ref)))

    # TODO(synk): proj=False path (plain pairwise concat with no Linear) is a pure
    # layout op; it is not kernelized here.
    print("KERNEL_OK")
</pallas_src>

<mosaic_0001>
module attributes {stable_mosaic.version = 11 : i64} {
  func.func @cat_encoder_cross_kernel(%arg0: i32, %arg1: i32, %arg2: memref<1x8x16xf32, #tpu.memory_space<vmem>>, %arg3: memref<1x8x16xf32, #tpu.memory_space<vmem>>, %arg4: memref<16x32xf32, #tpu.memory_space<vmem>>, %arg5: memref<16x32xf32, #tpu.memory_space<vmem>>, %arg6: memref<1x32xf32, #tpu.memory_space<vmem>>, %arg7: memref<1x8x256xf32, #tpu.memory_space<vmem>>) attributes {dimension_semantics = [#tpu.dimension_semantics<parallel>, #tpu.dimension_semantics<parallel>], iteration_bounds = array<i64: 2, 1>, scalar_prefetch = 0 : i64, scratch_operands = 0 : i64, tpu.core_type = #tpu.core_type<tc>, window_params = [{transform_indices = @transform_0, window_bounds = array<i64: 1, 8, 16>}, {transform_indices = @transform_1, window_bounds = array<i64: 1, 8, 16>}, {pipeline_mode = #tpu.pipeline_mode<synchronous>, transform_indices = @transform_2, window_bounds = array<i64: 16, 32>}, {pipeline_mode = #tpu.pipeline_mode<synchronous>, transform_indices = @transform_3, window_bounds = array<i64: 16, 32>}, {pipeline_mode = #tpu.pipeline_mode<synchronous>, transform_indices = @transform_4, window_bounds = array<i64: 1, 32>}, {transform_indices = @transform_5, window_bounds = array<i64: 1, 8, 256>}]} {
    %c0 = arith.constant 0 : index
    %c0_0 = arith.constant 0 : index
    %c0_1 = arith.constant 0 : index
    %0 = vector.load %arg2[%c0, %c0_0, %c0_1] : memref<1x8x16xf32, #tpu.memory_space<vmem>>, vector<1x8x16xf32>
    %1 = vector.shape_cast %0 : vector<1x8x16xf32> to vector<8x16xf32>
    %c0_2 = arith.constant 0 : index
    %c0_3 = arith.constant 0 : index
    %c0_4 = arith.constant 0 : index
    %2 = vector.load %arg3[%c0_2, %c0_3, %c0_4] : memref<1x8x16xf32, #tpu.memory_space<vmem>>, vector<1x8x16xf32>
    %3 = vector.shape_cast %2 : vector<1x8x16xf32> to vector<8x16xf32>
    %c0_5 = arith.constant 0 : index
    %c0_6 = arith.constant 0 : index
    %4 = vector.load %arg4[%c0_5, %c0_6] : memref<16x32xf32, #tpu.memory_space<vmem>>, vector<16x32xf32>
    %cst = arith.constant dense<0.000000e+00> : vector<8x32xf32>
    %5 = tpu.matmul %1, %4, %cst {dimension_numbers = #tpu.dot_dimension_numbers<[1], [0], [0], [1], [0, 0, 1, 1], [], []>} : vector<8x16xf32>, vector<16x32xf32>, vector<8x32xf32> -> vector<8x32xf32>
    %c0_7 = arith.constant 0 : index
    %c0_8 = arith.constant 0 : index
    %6 = vector.load %arg5[%c0_7, %c0_8] : memref<16x32xf32, #tpu.memory_space<vmem>>, vector<16x32xf32>
    %cst_9 = arith.constant dense<0.000000e+00> : vector<8x32xf32>
    %7 = tpu.matmul %3, %6, %cst_9 {dimension_numbers = #tpu.dot_dimension_numbers<[1], [0], [0], [1], [0, 0, 1, 1], [], []>} : vector<8x16xf32>, vector<16x32xf32>, vector<8x32xf32> -> vector<8x32xf32>
    %c0_10 = arith.constant 0 : index
    %c0_11 = arith.constant 0 : index
    %8 = vector.load %arg6[%c0_10, %c0_11] : memref<1x32xf32, #tpu.memory_space<vmem>>, vector<1x32xf32>
    %9 = vector.broadcast %8 : vector<1x32xf32> to vector<8x32xf32>
    %10 = arith.addf %7, %9 : vector<8x32xf32>
    %11 = vector.shape_cast %5 : vector<8x32xf32> to vector<8x1x32xf32>
    %12 = vector.shape_cast %10 : vector<8x32xf32> to vector<1x8x32xf32>
    %13 = vector.broadcast %11 : vector<8x1x32xf32> to vector<8x8x32xf32>
    %14 = vector.broadcast %12 : vector<1x8x32xf32> to vector<8x8x32xf32>
    %15 = arith.addf %13, %14 : vector<8x8x32xf32>
    %16 = vector.shape_cast %15 : vector<8x8x32xf32> to vector<8x256xf32>
    %c0_12 = arith.constant 0 : index
    %c0_13 = arith.constant 0 : index
    %c0_14 = arith.constant 0 : index
    %17 = vector.load %arg7[%c0_12, %c0_13, %c0_14] : memref<1x8x256xf32, #tpu.memory_space<vmem>>, vector<1x8x256xf32>
    %18 = vector.shape_cast %17 : vector<1x8x256xf32> to vector<8x256xf32>
    %19 = vector.shape_cast %16 : vector<8x256xf32> to vector<1x8x256xf32>
    tpu.vector_store %arg7[%c0_12, %c0_13, %c0_14], %19 {strides = array<i32>} : memref<1x8x256xf32, #tpu.memory_space<vmem>>, vector<1x8x256xf32>,
    return
  }
  func.func @transform_0(%arg0: i32, %arg1: i32) -> (i32, i32, i32) {
    %c0_i32 = arith.constant 0 : i32
    %c0_i32_0 = arith.constant 0 : i32
    return %arg0, %arg1, %c0_i32 : i32, i32, i32
  }
  func.func @transform_1(%arg0: i32, %arg1: i32) -> (i32, i32, i32) {
    %c0_i32 = arith.constant 0 : i32
    %c0_i32_0 = arith.constant 0 : i32
    %c0_i32_1 = arith.constant 0 : i32
    return %arg0, %c0_i32, %c0_i32_0 : i32, i32, i32
  }
  func.func @transform_2(%arg0: i32, %arg1: i32) -> (i32, i32) {
    %c0_i32 = arith.constant 0 : i32
    %c0_i32_0 = arith.constant 0 : i32
    %c0_i32_1 = arith.constant 0 : i32
    return %c0_i32, %c0_i32_0 : i32, i32
  }
  func.func @transform_3(%arg0: i32, %arg1: i32) -> (i32, i32) {
    %c0_i32 = arith.constant 0 : i32
    %c0_i32_0 = arith.constant 0 : i32
    %c0_i32_1 = arith.constant 0 : i32
    return %c0_i32, %c0_i32_0 : i32, i32
  }
  func.func @transform_4(%arg0: i32, %arg1: i32) -> (i32, i32) {
    %c0_i32 = arith.constant 0 : i32
    %c0_i32_0 = arith.constant 0 : i32
    %c0_i32_1 = arith.constant 0 : i32
    return %c0_i32, %c0_i32_0 : i32, i32
  }
  func.func @transform_5(%arg0: i32, %arg1: i32) -> (i32, i32, i32) {
    %c0_i32 = arith.constant 0 : i32
    %c0_i32_0 = arith.constant 0 : i32
    return %arg0, %arg1, %c0_i32 : i32, i32, i32
  }
}

</mosaic_0001>

<bundles_post_ra>
// kernel: tpu_custom_call.1
= control target key start
LH: loop header
LB: loop body
LE: loop exit
PB: predicated region body
PF: predicated region fallthrough
CT: control target
= control target key end

     0   :  { %s1289_s0 = inlined_call_operand.hbm [shape: f32[2,8,16], index: 0, kind: input, shape index: {}]   ;;  %s1290_s1 = inlined_call_operand.hbm [shape: f32[2,8,16], index: 1, kind: input, shape index: {}]   ;;  %s1291_s2 = inlined_call_operand.hbm [shape: f32[16,32], index: 2, kind: input, shape index: {}]   ;;  %s1292_s3 = inlined_call_operand.hbm [shape: f32[16,32], index: 3, kind: input, shape index: {}]   ;;  %s1293_s4 = inlined_call_operand.vmem [shape: f32[1,32], index: 4, kind: input, shape index: {}]   ;;  %s1294_s5 = inlined_call_operand.hbm [shape: f32[2,8,256], index: 5, kind: output, shape index: {}]  }
   0x1   :  { %1298 = sst [smem:[#allocation20_spill]] %s1291_s2 }
   0x2   :  { %1299 = sst [smem:[#allocation21_spill]] %s1292_s3 }
   0x3   :  { %10 = vsyncpa [#allocation3], 0 }
   0x4   :  { %12 = vsyncpa [#allocation3 + $0x1], 0 }
   0x5   :  { %13 = vsyncpa [#allocation6], 0 }
   0x6   :  { %15 = vsyncpa [#allocation6 + $0x1], 0 }
   0x7   :  { %16 = vsyncpa [#allocation9], 0 }
   0x8   :  { %17 = vsyncpa [#allocation4], 0 }
   0x9   :  { %19 = vsyncpa [#allocation4 + $0x1], 0  ;;  %s1086_s18 = smov 0   ;;  %s1088_s19 = smov 0  }
   0xa   :  { %s1090_s20 = smov 0   ;;  %s1092_s21 = smov 0  }
   0xb   :  { %s1094_s22 = smov 0   ;;  %s1096_s23 = smov 0  }
   0xc LB: > { %1300 = sst [smem:[#allocation16_spill]] %s1033_s20  ;;  %s1117_s24 = sadd.s32 4294967295, %s1045_s23   ;;  %s1045_s23 = sphi %s1096_s23, %s25_s23   ;;  %s1041_s22 = sphi %s1094_s22, %s1314_s22   ;;  %s1037_s21 = sphi %s1092_s21, %s1313_s21   ;;  %s1033_s20 = sphi %s1090_s20, %s1312_s20   ;;  %s1029_s19 = sphi %s1088_s19, %s1316_s19   ;;  %s1025_s18 = sphi %s1086_s18, %s1315_s18  }
   0xd   : > { %1301 = sst [smem:[#allocation17_spill]] %s1041_s22  ;;  %p713_p0 = scmp.ge.s32.totalorder %s1045_s23, 1 }
   0xe   : > { %p60_p1 = scmp.eq.s32.totalorder %s1117_s24, 0  ;;  %p187_p2 = scmp.lt.s32.totalorder %s1045_s23, 3 }
   0xf   : > { %s1302_s2 = sld [smem:[#allocation20_spill]]  ;;  %s1047_s29 = smov [#allocation7]  }
  0x10   : > { %p1125_p3 = pnand %p713_p0, %p187_p2  ;;  %s200_s30 = sshll.u32 %s1047_s29, 4  ;;  %s201_s30 = int_to_ptr.vmem [resolvable:$true] %s200_s30 }
  0x11   : > { %p716_p6 = scmp.ge.s32.totalorder %s1045_s23, 2  ;;  %s1304_s3 = sld [smem:[#allocation21_spill]] }
  0x12   : > { %p749_p4 = pneg %p1125_p3  ;;  %s1048_s9 = smov 128  }
  0x13   : > { %s1049_s10 = smov 8   ;;  %s1050_s11 = smov [#allocation8]  }
  0x14   : > { %p750_p5 = pnand %p749_p4, %p60_p1  ;;  %s214_s12 = sshll.u32 %s1050_s11, 4  ;;  %s215_s12 = int_to_ptr.vmem [resolvable:$true] %s214_s12 }
  0x15   : > { %s198_s27 = sshll.u32 %s1302_s2, 4  ;;  %s712_s13 = sadd.s32 4294967294, %s1045_s23   ;;  %s199_s27 = int_to_ptr.hbm [resolvable:$true] %s198_s27 }
  0x16   : > { %752 = dma.hbm_to_vmem [thread:$0]  (!%p750_p5), %s199_s27, 256, %s201_s30, [#allocation6], %s1048_s9, %s1048_s9, %s1049_s10  }
  0x17   : > { %s212_s8 = sshll.u32 %s1304_s3, 4  ;;  %s37_s14 = sadd.s32 1, %s1041_s22  ;;  %s213_s8 = int_to_ptr.hbm [resolvable:$true] %s212_s8 }
  0x18   : > { %755 = dma.hbm_to_vmem [thread:$0]  (!%p750_p5), %s213_s8, 256, %s215_s12, [#allocation9], %s1048_s9, %s1048_s9, %s1049_s10  }
  0x19   : > { %p39_p7 = scmp.ge.s32.totalorder %s37_s14, 2  ;;  %s46_s15 = sadd.s32 1, %s1033_s20 }
  0x1a   : > { %p53_p8 = scmp.ne.s32.totalorder %s1033_s20, %s1029_s19  ;;  %p54_p9 = scmp.eq.s32.totalorder %s1045_s23, 0 }
  0x1b   : > { %s1318_s14 = smov (%p39_p7, %s37_s14), 0  ;;  %p59_p11 = scmp.ne.s32.totalorder %s1029_s19, %s1025_s18 }
  0x1c   : > { %1305 = sst [smem:[#allocation18_spill]] %s1318_s14  ;;  %p1145_p10 = por %p54_p9, %p53_p8 }
  0x1d   : > { %s41_s17 = ssub.s32 %s1041_s22, %s1318_s14  ;;  %p174_p12 = scmp.eq.s32.totalorder %s1117_s24, 1 }
  0x1e   : > { %p44_p13 = scmp.eq.s32.totalorder %s41_s17, 0  ;;  %p1156_p0 = por %p60_p1, %p59_p11 }
  0x1f   : > { %p1160_p2 = por %p174_p12, %p53_p8  ;;  %p180_p4 = scmp.eq.s32.totalorder %s712_s13, 1 }
  0x20   : > { %s1165_s27 = scalar_select %p44_p13, %s1033_s20, %s46_s15  }
  0x21   : > { %p1167_p5 = por %p180_p4, %p59_p11  ;;  %p769_p7 = scmp.lt.s32.totalorder %s1045_s23, 2 }
  0x22   : > { %1309 = sst [smem:[#allocation19_spill]] %s1165_s27  ;;  %s231_s30 = sand.u32 1, %s1033_s20  }
  0x23   : > { %s718_s6 = sshll.u32 %s1041_s22, 3  ;;  %s717_s7 = sshll.u32 %s231_s30, 3 }
  0x24   : > { %s240_s10 = scalar_lea.hbm %s1289_s0, %s718_s6  ;;  %s235_s12 = scalar_lea.vmem [#allocation2], %s717_s7 }
  0x25   : > { %s242_s11 = sshll.u32 %s240_s10, 4  ;;  %s244_s17 = sshll.u32 %s235_s12, 4  ;;  %s243_s11 = int_to_ptr.hbm [resolvable:$true] %s242_s11  ;;  %s245_s17 = int_to_ptr.vmem [resolvable:$true] %s244_s17 }
  0x26   : > { %p757_p8 = pnand %p769_p7, %p1145_p10  ;;  %s259_s2 = scalar_lea.hbm %s1290_s1, %s718_s6 }
  0x27   : > { %s251_s3 = sand.u32 1, %s1045_s23   ;;  %s232_s14 = scalar_lea.sflag [#allocation3], %s231_s30 }
  0x28   : > { %759 = dma.hbm_to_vmem [thread:$0]  (!%p757_p8), %s243_s11, 128, %s245_s17, %s232_s14  }
  0x29   : > { %s261_s22 = sshll.u32 %s259_s2, 4  ;;  %s255_s27 = scalar_lea.vmem [#allocation5], %s717_s7  ;;  %s262_s22 = int_to_ptr.hbm [resolvable:$true] %s261_s22 }
  0x2a   : > { %s263_s20 = sshll.u32 %s255_s27, 4  ;;  %s252_s8 = scalar_lea.sflag [#allocation6], %s251_s3  ;;  %s264_s20 = int_to_ptr.vmem [resolvable:$true] %s263_s20 }
  0x2b   : > { %762 = dma.hbm_to_vmem [thread:$0]  (!%p757_p8), %s262_s22, 128, %s264_s20, %s252_s8  }
  0x2c   : > { %272 = sbr.rel (%p1125_p3) target bundleno = 336 (0x150), region = 40  ;;  %s1186_s16 = sand.u32 (!%p1125_p3), 1, %s1029_s19  }
  0x2d   : > { %s722_s6 = sshll.u32 (!%p1125_p3), %s1186_s16, 3  ;;  %s275_s9 = scalar_lea.sflag (!%p1125_p3), [#allocation3], %s1186_s16 }
  0x2e   : > { %s278_s30 = scalar_lea.vmem (!%p1125_p3), [#allocation2], %s722_s6 }
  0x31   : > { %1004 = dma.done.wait (%p1156_p0), %s275_s9, 128  }
  0x32   : > { %1006 = vsyncadd (%p1156_p0), %s275_s9, 4294967168  ;;  %s284_s2 = sand.u32 1, %s1117_s24   ;;  %s288_s20 = scalar_lea.vmem [#allocation5], %s722_s6 }
  0x33   : > { %s285_s3 = scalar_lea.sflag [#allocation6], %s284_s2 }
  0x34   : > { %1008 = dma.done.wait (%p1156_p0), %s285_s3, 128  }
  0x35   : > { %1010 = vsyncadd (%p1156_p0), %s285_s3, 4294967168 }
  0x36   : > { %1012 = dma.done.wait (%p60_p1), [#allocation6], 256  }
  0x37   : > { %1014 = vsyncadd (%p60_p1), [#allocation6], 4294967040 }
  0x38   : > { %1016 = dma.done.wait (%p60_p1), [#allocation9], 256  }
  0x39   : > { %1018 = vsyncadd (%p60_p1), [#allocation9], 4294967040  ;;  %v334_v0 = vld [vmem:[#allocation7 + $0x8] sm:$0xff]  ;;  %v360_v1 = vld [vmem:[#allocation8 + $0x8] sm:$0xff]  ;;  %vm335_vm0 = vcmask 130048   ;;  %vm421_vm1 = vcmask 1047556  }
  0x3a   : > { %v333_v2 = vld [vmem:[#allocation7] sm:$0xff]  ;;  %353 = vmatpush.msra.mxu0 %v334_v0  ;;  %382 = vmatpush.msra.mxu1 %v360_v1  ;;  %v359_v3 = vld [vmem:[#allocation8] sm:$0xff]  ;;  %v1051_v8 = vmov 1983009808   ;;  %v1052_v10 = vmov 1934713408  }
  0x3b   : > { %v331_v4 = vld [vmem:[%s278_s30] sm:$0xff]  ;;  %v332_v5 = vld [vmem:[%s288_s20] sm:$0xff]  ;;  %v426_v9 = vunpack.c.l.s4 %v1051_v8  ;;  %v474_v11 = vunpack.c.l.s4 %v1052_v10  ;;  %s1053_s24 = smov 96   ;;  %s1054_s14 = smov 32   ;;  %vm557_vm2 = vcmask 261120   ;;  %vm559_vm3 = vcmask 523264  }
  0x3c   : > { %354 = vmatpush.msra.mxu0 %v333_v2  ;;  %383 = vmatpush.msra.mxu1 %v359_v3  ;;  %v830_v7 = vld [vmem:[%s1293_s4] ss:$0 sm:$0xff]  ;;  %s1055_s25 = smov 64   ;;  %s726_s27 = sshll.u32 %s1186_s16, 4  ;;  %vm561_vm4 = vcmask 785408  }
  0x3d   : > { %727 = vmatmul.msk.f32.vlgmr.msra.gmra.mxu0 %vm335_vm0, %v331_v4  ;;  %728 = vmatmul.msk.f32.vlgmr.msra.gmra.mxu1 %vm335_vm0, %v332_v5  ;;  %v427_v29 = vunpack.c.0.s8 %v426_v9  ;;  %v1210_v30 = vunpack.c.0.s8 %v474_v11  ;;  %s734_s7 = sshll.u32 %s1037_s21, 4  ;;  %s330_s10 = scalar_lea.vmem [#allocation10], %s726_s27 }
  0x3e   : > { %s582_s17 = scalar_lea.hbm %s1294_s5, %s734_s7  ;;  %s584_s13 = sshll.u32 %s330_s10, 4  ;;  %s585_s13 = int_to_ptr.vmem [resolvable:$true] %s584_s13 }
  0x3f   : > { %s586_s15 = sshll.u32 %s582_s17, 4  ;;  %s569_s21 = scalar_lea.sflag [#allocation4], %s1186_s16  ;;  %s587_s15 = int_to_ptr.hbm [resolvable:$true] %s586_s15 }
  0x40   : > { %s965_s8 = sshra.s32 %s587_s15, 4  ;;  %s971_s2 = scalar_lea.hbm %s1294_s5, 32  ;;  %s966_s8 = int_to_ptr.hbm [resolvable:$true] %s965_s8 }
  0x41   : > { %s967_s6 = scalar_lea.hbm %s966_s8, 16  ;;  %p972_p10 = scmp.lt.s32.totalorder %s966_s8, %s1294_s5 }
  0x42   : > { %p968_p1 = scmp.ne.s32.totalorder %s966_s8, %s967_s6  ;;  %p973_p11 = scmp.lt.s32.totalorder %s971_s2, %s967_s6 }
  0x44   : > { %p969_p3 = pnand %p968_p1, %p1160_p2  ;;  %p974_p12 = por %p973_p11, %p972_p10 }
  0x46   : > { %p970_p9 = pneg %p969_p3 }
  0x48   : > { %p975_p13 = pnand %p974_p12, %p970_p9 }
  0xba   : > { %v356_v6 = vpop.f32.mrf.mxu0  ;;  %v385_v16 = vpop.f32.mrf.mxu1 }
  0xbb   : > { %v389_v12 = vrot.slane %v356_v6, 1  ;;  %v390_v13 = vrot.slane %v356_v6, 2  ;;  %v391_v14 = vrot.slane %v356_v6, 3  ;;  %v392_v15 = vrot.slane %v356_v6, 4 }
  0xbc   : > { %v393_v17 = vrot.slane %v356_v6, 5  ;;  %v394_v18 = vrot.slane %v356_v6, 6  ;;  %v395_v19 = vrot.slane %v356_v6, 7  ;;  %v396_v20 = vperm.slane %v356_v6, 0 }
  0xbd   : > { %v397_v21 = vperm.slane %v389_v12, 0  ;;  %v398_v22 = vperm.slane %v390_v13, 0  ;;  %v399_v23 = vperm.slane %v391_v14, 0  ;;  %v400_v24 = vperm.slane %v392_v15, 0 }
  0xbe   : > { %v401_v25 = vperm.slane %v393_v17, 0  ;;  %v402_v26 = vperm.slane %v394_v18, 0  ;;  %v403_v27 = vperm.slane %v395_v19, 0  ;;  %v386_v28 = vadd.f32 %v830_v7, %v385_v16 }
  0xc0   : > { %v412_v31 = vadd.f32 %v396_v20, %v386_v28  ;;  %v413_v32 = vadd.f32 %v397_v21, %v386_v28  ;;  %v414_v33 = vadd.f32 %v398_v22, %v386_v28  ;;  %v415_v34 = vadd.f32 %v399_v23, %v386_v28 }
  0xc1   : > { %v416_v35 = vadd.f32 %v400_v24, %v386_v28  ;;  %v417_v36 = vadd.f32 %v401_v25, %v386_v28  ;;  %v418_v37 = vadd.f32 %v402_v26, %v386_v28  ;;  %v419_v38 = vadd.f32 %v403_v27, %v386_v28 }
  0xc2   : > { %v420_v39 = vrot.slane %v414_v33, 4  ;;  %v433_v40 = vrot.slane %v415_v34, 4  ;;  %v423_v41 = vrot.slane %v412_v31, 4  ;;  %v435_v42 = vrot.slane %v413_v32, 4 }
  0xc3   : > { %v445_v43 = vrot.slane %v418_v37, 4  ;;  %v457_v44 = vrot.slane %v419_v38, 4  ;;  %v447_v45 = vrot.slane %v416_v35, 4  ;;  %v459_v46 = vrot.slane %v417_v36, 4 }
  0xc4   : > { %v422_v47 = vsel %vm421_vm1, %v420_v39, %v412_v31  ;;  %v434_v48 = vsel %vm421_vm1, %v433_v40, %v413_v32  ;;  %v424_v49 = vsel %vm421_vm1, %v414_v33, %v423_v41  ;;  %v436_v50 = vsel %vm421_vm1, %v415_v34, %v435_v42 }
  0xc5   : > { %v428_v51 = vperm.slane %v422_v47, %v427_v29  ;;  %v440_v52 = vperm.slane %v434_v48, %v427_v29  ;;  %v446_v53 = vsel %vm421_vm1, %v445_v43, %v416_v35  ;;  %v458_v54 = vsel %vm421_vm1, %v457_v44, %v417_v36 }
  0xc6   : > { %v452_v55 = vperm.slane %v446_v53, %v427_v29  ;;  %v464_v56 = vperm.slane %v458_v54, %v427_v29  ;;  %v432_v57 = vperm.slane %v424_v49, %v427_v29  ;;  %v444_v58 = vperm.slane %v436_v50, %v427_v29 }
  0xc7   : > { %v471_v59 = vrot.slane %v428_v51, 4  ;;  %v469_v60 = vrot.slane %v440_v52, 4  ;;  %v448_v61 = vsel %vm421_vm1, %v418_v37, %v447_v45  ;;  %v460_v62 = vsel %vm421_vm1, %v419_v38, %v459_v46 }
  0xc8   : > { %v495_v63 = vrot.slane %v452_v55, 4  ;;  %v493_v0 = vrot.slane %v464_v56, 4  ;;  %v456_v1 = vperm.slane %v448_v61, %v427_v29  ;;  %v468_v2 = vperm.slane %v460_v62, %v427_v29 }
  0xc9   : > { %v472_v3 = vsel %vm421_vm1, %v440_v52, %v471_v59  ;;  %v470_v4 = vsel %vm421_vm1, %v469_v60, %v428_v51  ;;  %v483_v5 = vrot.slane %v432_v57, 4  ;;  %v481_v6 = vrot.slane %v444_v58, 4 }
  0xca   : > { %v480_v7 = vperm.slane %v472_v3, %v1210_v30  ;;  %v496_v8 = vsel %vm421_vm1, %v464_v56, %v495_v63  ;;  %v476_v9 = vperm.slane %v470_v4, %v1210_v30  ;;  %v494_v10 = vsel %vm421_vm1, %v493_v0, %v452_v55 }
  0xcb   : > { %v504_v11 = vperm.slane %v496_v8, %v1210_v30  ;;  %v500_v12 = vperm.slane %v494_v10, %v1210_v30  ;;  %v484_v13 = vsel %vm421_vm1, %v444_v58, %v483_v5  ;;  %v507_v14 = vrot.slane %v456_v1, 4 }
  0xcc   : > { %v523_v15 = vrot.slane %v480_v7, 4  ;;  %v519_v16 = vrot.slane %v476_v9, 4  ;;  %v482_v17 = vsel %vm421_vm1, %v481_v6, %v432_v57  ;;  %v492_v23 = vperm.slane %v484_v13, %v1210_v30 }
  0xcd   : > { %v521_v18 = vrot.slane %v504_v11, 4  ;;  %v517_v19 = vrot.slane %v500_v12, 4  ;;  %v508_v20 = vsel %vm421_vm1, %v468_v2, %v507_v14  ;;  %v488_v24 = vperm.slane %v482_v17, %v1210_v30 }
  0xce   : > { %v524_v21 = vsel %vm421_vm1, %v504_v11, %v523_v15  ;;  %v520_v22 = vsel %vm421_vm1, %v500_v12, %v519_v16  ;;  %v516_v26 = vperm.slane %v508_v20, %v1210_v30  ;;  %v505_v27 = vrot.slane %v468_v2, 4 }
  0xcf   : > { %542 = vrot.lane.b32.xlu2 %v524_v21, %s1053_s24  ;;  %v522_v25 = vsel %vm421_vm1, %v521_v18, %v480_v7  ;;  %534 = vrot.lane.b32.xlu0 %v520_v22, %s1054_s14  ;;  %v518_v28 = vsel %vm421_vm1, %v517_v19, %v476_v9  ;;  %v531_v31 = vrot.slane %v492_v23, 4  ;;  %v527_v33 = vrot.slane %v488_v24, 4 }
  0xd0   : > { %538 = vrot.lane.b32.xlu1 %v522_v25, %s1055_s25  ;;  %v506_v29 = vsel %vm421_vm1, %v505_v27, %v456_v1  ;;  %v529_v34 = vrot.slane %v516_v26, 4 }
  0xd1   : > { %v512_v32 = vperm.slane %v506_v29, %v1210_v30  ;;  %v532_v36 = vsel %vm421_vm1, %v516_v26, %v531_v31 }
  0xd2   : > { %v530_v39 = vsel %vm421_vm1, %v529_v34, %v492_v23 }
  0xd3   : > { %v525_v35 = vrot.slane %v512_v32, 4  ;;  %v528_v37 = vsel %vm421_vm1, %v512_v32, %v527_v33 }
  0xd5   : > { %v526_v38 = vsel %vm421_vm1, %v525_v35, %v488_v24 }
  0xd7   : > { %554 = vrot.lane.b32.xlu2 %v532_v36, %s1053_s24  ;;  %546 = vrot.lane.b32.xlu0 %v528_v37, %s1054_s14 }
  0xd8   : > { %550 = vrot.lane.b32.xlu1 %v530_v39, %s1055_s25 }
 0x129   : > { %v543_v40 = vpop.permute.xlu2 %542 }
 0x131   : > { %v555_v48 = vpop.permute.xlu2 %554 }
 0x141   : > { %v535_v30 = vpop.permute.xlu0 %534 }
 0x142   : > { %v539_v41 = vpop.permute.xlu1 %538  ;;  %v558_v42 = vsel %vm557_vm2, %v518_v28, %v535_v30 }
 0x143   : > { %v560_v43 = vsel %vm559_vm3, %v558_v42, %v539_v41 }
 0x144   : > { %v562_v44 = vsel %vm561_vm4, %v560_v43, %v543_v40 }
 0x145   : > { %566 = vst [vmem:[%s330_s10] sm:$0xff] %v562_v44 }
 0x149   : > { %v547_v45 = vpop.permute.xlu0 %546 }
 0x14a   : > { %v551_v46 = vpop.permute.xlu1 %550  ;;  %v563_v47 = vsel %vm557_vm2, %v526_v38, %v547_v45 }
 0x14b   : > { %v564_v49 = vsel %vm559_vm3, %v563_v47, %v551_v46 }
 0x14c   : > { %v565_v50 = vsel %vm561_vm4, %v564_v49, %v555_v48 }
 0x14d   : > { %567 = vst [vmem:[%s330_s10 + $0x8] sm:$0xff] %v565_v50 }
 0x14e   : > { %978 = shalt.err (!%p975_p13)
}
 0x14f   : > { %747 = dma.vmem_to_hbm [thread:$0]  (%p1160_p2), %s585_s13, 256, %s587_s15, %s569_s21  }
 0x150 PF: > { %s598_s16 = sand.u32 1, %s1025_s18   ;;  %p764_p0 = pnand %p716_p6, %p1167_p5 }
 0x151   : > { %s599_s22 = scalar_lea.sflag [#allocation4], %s598_s16 }
 0x152   : > { %p765_p4 = pneg %p764_p0 }
 0x154   : > { %1020 = dma.done.wait (%p765_p4), %s599_s22, 256  }
 0x155   : > { %1022 = vsyncadd (%p765_p4), %s599_s22, 4294967040  ;;  %s25_s23 = sadd.s32 1, %s1045_s23   ;;  %s1311_s28 = sld [smem:[#allocation16_spill]] }
 0x156   : > { %p22_p7 = scmp.ge.s32.totalorder %s25_s23, 4   ;;  %s1312_s20 = sld [smem:[#allocation19_spill]] }
 0x157   : > { %s1313_s21 = sld [smem:[#allocation17_spill]]  ;;  %s1315_s18 = smov %s1029_s19 }
 0x158   : > { %s1314_s22 = sld [smem:[#allocation18_spill]]  ;;  %24 = sbr.rel (!%p22_p7) target bundleno = 12 (0xc), region = 106 }
 0x15b   : > { %s1316_s19 = smov %s1311_s28 }
 0x15d   :  { %605 = vsyncpa [#allocation3], 1 }
 0x15e   :  { %607 = vsyncpa [#allocation3 + $0x1], 1 }
 0x15f   :  { %608 = vsyncpa [#allocation6], 1 }
 0x160   :  { %610 = vsyncpa [#allocation6 + $0x1], 1 }
 0x161   :  { %611 = vsyncpa [#allocation9], 1 }
 0x162   :  { %612 = vsyncpa [#allocation4], 1 }
 0x163   :  { %614 = vsyncpa [#allocation4 + $0x1], 1 }

</bundles_post_ra>
